<compile_context>
chip_gen: v6e
topology: v6e:2x2x1
jax: 0.10.0
libtpu: 0.0.40
codegen_flags: <defaults>
</compile_context>

<pallas_src>
import jax
import jax.numpy as jnp
from jax import lax
from jax.experimental import pallas as pl
from jax.experimental.pallas import tpu as pltpu

KH = KW = 3
EPS = 1e-5


def conv_bn_kernel(w_ref, p_ref, o_ref):
    # w_ref: (Cout, Cin*KH*KW)   p_ref: (Cin*KH*KW, P)   o_ref: (Cout, P),  P = N*OH*OW
    w = w_ref[...]
    patches = p_ref[...]

    # Conv as a single lane-dense im2col matmul on the MXU (f32 multi-pass).
    s = jnp.dot(w, patches, preferred_element_type=jnp.float32)       # (Cout, P)

    # BatchNorm2d(affine=False), training mode: biased per-channel batch statistics,
    # single pass (E[s^2] - mean^2).  Fine in f32 with near-zero-mean activations.
    inv_p = 1.0 / s.shape[1]
    mean = jnp.sum(s, axis=1, keepdims=True) * inv_p
    mean_sq = jnp.sum(s * s, axis=1, keepdims=True) * inv_p
    var = mean_sq - mean * mean
    o_ref[...] = ((s - mean) * lax.rsqrt(var + EPS)).astype(o_ref.dtype)


def conv_bn_forward(x_nchw, w_oihw, bias=None):
    """x_nchw: (N, Cin, H, W); w_oihw: (Cout, Cin, KH, KW). Returns NCHW output.

    `bias` is accepted for parity with the PyTorch module but intentionally unused:
    under affine=False training-mode BatchNorm a per-channel constant bias is exactly
    cancelled by the mean subtraction.
    """
    del bias
    N, Cin, H, W = x_nchw.shape
    Cout = w_oihw.shape[0]
    OH, OW = H - KH + 1, W - KW + 1
    P = N * OH * OW

    # im2col in ONE HLO.  Output channels of the identity-kernel grouped conv are ordered
    # (ci, kh, kw) -- exactly matching w.reshape(Cout, -1) -- and the "CNHW" out-spec puts
    # that tap axis first, so the follow-up reshape to (27, P) is a contiguous no-op.
    patches = lax.conv_general_dilated_patches(
        x_nchw,
        filter_shape=(KH, KW),
        window_strides=(1, 1),
        padding="VALID",
        dimension_numbers=("NCHW", "OIHW", "CNHW"),
        precision=lax.Precision.HIGHEST,       # keep patch values exact f32
    ).reshape(Cin * KH * KW, P)                # (27, P)

    w_flat = w_oihw.reshape(Cout, Cin * KH * KW)                      # (Cout, 27)

    out = pl.pallas_call(
        conv_bn_kernel,
        out_shape=jax.ShapeDtypeStruct((Cout, P), x_nchw.dtype),
        in_specs=[
            pl.BlockSpec(memory_space=pltpu.MemorySpace.VMEM),
            pl.BlockSpec(memory_space=pltpu.MemorySpace.VMEM),
        ],
        out_specs=pl.BlockSpec(memory_space=pltpu.MemorySpace.VMEM),
    )(w_flat, patches)

    # (Cout, N*OH*OW) -> (N, Cout, OH, OW)   (tiny 4.7 KB transpose; kept in wrapper per
    # review guidance -- folding it in-kernel would force masked 196-lane stores)
    return jnp.transpose(out.reshape(Cout, N, OH, OW), (1, 0, 2, 3))


def _reference(x_nchw, w_oihw, bias):
    """Plain-JAX reference (conv WITH bias + training-mode BN, affine=False), f32-exact."""
    s = lax.conv_general_dilated(
        x_nchw, w_oihw, window_strides=(1, 1), padding="VALID",
        dimension_numbers=("NCHW", "OIHW", "NCHW"),
        precision=lax.Precision.HIGHEST,
    ) + bias.reshape(1, -1, 1, 1)
    mean = jnp.mean(s, axis=(0, 2, 3), keepdims=True)
    var = jnp.mean((s - mean) ** 2, axis=(0, 2, 3), keepdims=True)
    return (s - mean) * lax.rsqrt(var + EPS)


if __name__ == "__main__":
    key = jax.random.PRNGKey(0)
    kx, kw, kb = jax.random.split(key, 3)

    # Small shapes consistent with the module: Conv2d(3, 3, 3) expects 3 input channels.
    N, Cin, H, W = 2, 3, 16, 16
    Cout = 3

    x = jax.random.normal(kx, (N, Cin, H, W), dtype=jnp.float32)

    # Deterministic PyTorch-style init: U(-1/sqrt(fan_in), 1/sqrt(fan_in))
    fan_in = Cin * KH * KW
    bound = 1.0 / (fan_in ** 0.5)
    w = jax.random.uniform(kw, (Cout, Cin, KH, KW), minval=-bound, maxval=bound,
                           dtype=jnp.float32)
    b = jax.random.uniform(kb, (Cout,), minval=-bound, maxval=bound, dtype=jnp.float32)

    y = jax.jit(conv_bn_forward)(x, w, b)
    jax.block_until_ready(y)

    y_ref = _reference(x, w, b)
    assert y.shape == (N, Cout, H - KH + 1, W - KW + 1)
    assert jnp.allclose(y, y_ref, atol=2e-4, rtol=1e-4), \
        float(jnp.max(jnp.abs(y - y_ref)))

    print("KERNEL_OK")
</pallas_src>

<mosaic_0001>
module attributes {stable_mosaic.version = 11 : i64} {
  func.func @conv_bn_kernel(%arg0: memref<3x27xf32, #tpu.memory_space<vmem>>, %arg1: memref<27x392xf32, #tpu.memory_space<vmem>>, %arg2: memref<3x392xf32, #tpu.memory_space<vmem>>) attributes {dimension_semantics = [], scalar_prefetch = 0 : i64, scratch_operands = 0 : i64, tpu.core_type = #tpu.core_type<tc>} {
    %c0 = arith.constant 0 : index
    %c0_0 = arith.constant 0 : index
    %0 = vector.load %arg0[%c0, %c0_0] : memref<3x27xf32, #tpu.memory_space<vmem>>, vector<3x27xf32>
    %c0_1 = arith.constant 0 : index
    %c0_2 = arith.constant 0 : index
    %1 = vector.load %arg1[%c0_1, %c0_2] : memref<27x392xf32, #tpu.memory_space<vmem>>, vector<27x392xf32>
    %cst = arith.constant dense<0.000000e+00> : vector<3x392xf32>
    %2 = tpu.matmul %0, %1, %cst {dimension_numbers = #tpu.dot_dimension_numbers<[1], [0], [0], [1], [0, 0, 1, 1], [], []>} : vector<3x27xf32>, vector<27x392xf32>, vector<3x392xf32> -> vector<3x392xf32>
    %cst_3 = arith.constant dense<0.000000e+00> : vector<3xf32>
    %3 = vector.multi_reduction <add>, %2, %cst_3 [1] : vector<3x392xf32> to vector<3xf32>
    %4 = vector.shape_cast %3 : vector<3xf32> to vector<3x1xf32>
    %cst_4 = arith.constant 0.00255102036 : f32
    %5 = vector.broadcast %cst_4 : f32 to vector<3x1xf32>
    %6 = arith.mulf %4, %5 : vector<3x1xf32>
    %7 = arith.mulf %2, %2 : vector<3x392xf32>
    %cst_5 = arith.constant dense<0.000000e+00> : vector<3xf32>
    %8 = vector.multi_reduction <add>, %7, %cst_5 [1] : vector<3x392xf32> to vector<3xf32>
    %9 = vector.shape_cast %8 : vector<3xf32> to vector<3x1xf32>
    %cst_6 = arith.constant 0.00255102036 : f32
    %10 = vector.broadcast %cst_6 : f32 to vector<3x1xf32>
    %11 = arith.mulf %9, %10 : vector<3x1xf32>
    %12 = arith.mulf %6, %6 : vector<3x1xf32>
    %13 = arith.subf %11, %12 : vector<3x1xf32>
    %14 = vector.broadcast %6 : vector<3x1xf32> to vector<3x392xf32>
    %15 = arith.subf %2, %14 : vector<3x392xf32>
    %cst_7 = arith.constant 9.99999974E-6 : f32
    %16 = vector.broadcast %cst_7 : f32 to vector<3x1xf32>
    %17 = arith.addf %13, %16 : vector<3x1xf32>
    %18 = math.rsqrt %17 : vector<3x1xf32>
    %19 = vector.broadcast %18 : vector<3x1xf32> to vector<3x392xf32>
    %20 = arith.mulf %15, %19 : vector<3x392xf32>
    %c0_8 = arith.constant 0 : index
    %c0_9 = arith.constant 0 : index
    %21 = vector.load %arg2[%c0_8, %c0_9] : memref<3x392xf32, #tpu.memory_space<vmem>>, vector<3x392xf32>
    tpu.vector_store %arg2[%c0_8, %c0_9], %20 {strides = array<i32>} : memref<3x392xf32, #tpu.memory_space<vmem>>, vector<3x392xf32>,
    return
  }
}

</mosaic_0001>

<bundles_post_ra>
// kernel: conv_bn_forward.1
= control target key start
LH: loop header
LB: loop body
LE: loop exit
PB: predicated region body
PF: predicated region fallthrough
CT: control target
= control target key end

     0   :  { %vm32_vm0 = vcmask 1042432   ;;  %v249_v2 = vmov 0.0   ;;  %vm28_vm1 = vcmask 220160   ;;  %vm192_vm2 = vcmask 59392   ;;  %s333_s1 = inlined_call_operand.vmem [shape: f32[27,392], index: 1, kind: input, shape index: {}]   ;;  %s334_s0 = inlined_call_operand.vmem [shape: f32[3,27], index: 0, kind: input, shape index: {}]   ;;  %s335_s2 = inlined_call_operand.vmem [shape: f32[3,392], index: 2, kind: output, shape index: {}]  }
   0x1   :  { %v25_v0 = vld [vmem:[%s333_s1 + $0x68] sm:$0x7]  ;;  %v24_v1 = vld [vmem:[%s333_s1 + $0x60] sm:$0x7]  ;;  %109 = vmatprep.mubr.f32.mxu0 %v249_v2  ;;  %180 = vmatprep.mubr.f32.mxu1 %v249_v2  ;;  %v27_v4 = vld [vmem:[%s333_s1 + $0x78] sm:$0x7] }
   0x2   :  { %240 = vmatprep.subr.msk.mxu0 %vm32_vm0, %v25_v0  ;;  %v21_v3 = vld [vmem:[%s333_s1 + $0x48] sm:$0xff]  ;;  %v20_v5 = vld [vmem:[%s333_s1 + $0x40] sm:$0xff]  ;;  %243 = vmatprep.subr.msk.mxu1 %vm32_vm0, %v27_v4  ;;  %v26_v6 = vld [vmem:[%s333_s1 + $0x70] sm:$0x7]  ;;  %vm233_vm3 = vcmask 63492  }
   0x3   :  { %241 = vmatpush1.msk.msra.mxu0 %vm32_vm0, %v24_v1  ;;  %v17_v7 = vld [vmem:[%s333_s1 + $0x28] sm:$0xff]  ;;  %v23_v8 = vld [vmem:[%s333_s1 + $0x58] sm:$0xff]  ;;  %244 = vmatpush1.msk.msra.mxu1 %vm32_vm0, %v26_v6  ;;  %v16_v9 = vld [vmem:[%s333_s1 + $0x20] sm:$0xff] }
   0x4   :  { %71 = vmatprep.subr.mxu0 %v21_v3  ;;  %v22_v10 = vld [vmem:[%s333_s1 + $0x50] sm:$0xff]  ;;  %142 = vmatprep.subr.mxu1 %v23_v8  ;;  %v13_v11 = vld [vmem:[%s333_s1 + $0x8] sm:$0xff]  ;;  %v19_v12 = vld [vmem:[%s333_s1 + $0x38] sm:$0xff] }
   0x5   :  { %72 = vmatpush1.msra.mxu0 %v20_v5  ;;  %v18_v13 = vld [vmem:[%s333_s1 + $0x30] sm:$0xff]  ;;  %143 = vmatpush1.msra.mxu1 %v22_v10  ;;  %v12_v14 = vld [vmem:[%s333_s1] sm:$0xff]  ;;  %v15_v15 = vld [vmem:[%s333_s1 + $0x18] sm:$0xff] }
   0x6   :  { %73 = vmatprep.subr.mxu0 %v17_v7  ;;  %144 = vmatprep.subr.mxu1 %v19_v12  ;;  %v11_v16 = vld [vmem:[%s334_s0] sm:$0x7]  ;;  %v14_v17 = vld [vmem:[%s333_s1 + $0x10] sm:$0xff]  ;;  %vm234_vm4 = vmor %vm233_vm3, %vm32_vm0 }
   0x7   :  { %74 = vmatpush1.msra.mxu0 %v16_v9  ;;  %145 = vmatpush1.msra.mxu1 %v18_v13 }
   0x8   :  { %75 = vmatprep.subr.mxu0 %v13_v11  ;;  %146 = vmatprep.subr.mxu1 %v15_v15 }
   0x9   :  { %76 = vmatpush1.msra.mxu0 %v12_v14  ;;  %147 = vmatpush1.msra.mxu1 %v14_v17 }
   0xa   :  { %242 = vmatmul.mubr.msk.f32.vlgmr.msra.gmra.mxu0 %vm28_vm1, %v11_v16  ;;  %245 = vmatmul.mubr.msk.f32.vlgmr.msra.gmra.mxu1 %vm28_vm1, %v11_v16 }
  0xca   :  { %v111_v18 = vpop.f32.mrf.mxu0  ;;  %v182_v20 = vpop.f32.mrf.mxu1 }
  0xcb   :  { %v198_v19 = vmul.f32 %v111_v18, %v111_v18  ;;  %v200_v22 = vmul.f32 %v182_v20, %v182_v20  ;;  %v187_v23 = vsel %vm32_vm0, %v111_v18, 0.0  ;;  %v190_v26 = vsel %vm32_vm0, %v182_v20, 0.0 }
  0xcc   :  { %v113_v21 = vpop.f32.mrf.mxu0  ;;  %v184_v28 = vpop.f32.mrf.mxu1 }
  0xcd   :  { %v188_v24 = vsel %vm32_vm0, %v113_v21, 0.0  ;;  %v199_v25 = vmul.f32 %v113_v21, %v113_v21  ;;  %v202_v29 = vsel %vm32_vm0, %v198_v19, 0.0  ;;  %v205_v31 = vsel %vm32_vm0, %v200_v22, 0.0 }
  0xce   :  { %v189_v27 = vadd.f32 %v188_v24, %v187_v23  ;;  %v201_v34 = vmul.f32 %v184_v28, %v184_v28  ;;  %v193_v35 = vsel %vm192_vm2, %v184_v28, 0.0 }
  0xcf   :  { %v203_v30 = vsel %vm32_vm0, %v199_v25, 0.0 }
  0xd0   :  { %v204_v32 = vadd.f32 %v203_v30, %v202_v29  ;;  %v191_v33 = vadd.f32 %v190_v26, %v189_v27  ;;  %v207_v38 = vsel %vm192_vm2, %v201_v34, 0.0 }
  0xd2   :  { %v194_v36 = vadd.f32 %v193_v35, %v191_v33  ;;  %v206_v37 = vadd.f32 %v205_v31, %v204_v32 }
  0xd4   :  { %195 = vadd.xlane.f32.xlu0 %v194_v36  ;;  %v208_v39 = vadd.f32 %v207_v38, %v206_v37 }
  0xd8   :  { %209 = vadd.xlane.f32.xlu0 %v208_v39 }
 0x15d   :  { %v196_v40 = vpop.xlane.xlu0 %195 }
 0x15e   :  { %v197_v41 = vmul.f32 0.0025510204, %v196_v40 }
 0x160   :  { %v212_v43 = vmul.f32 %v197_v41, %v197_v41  ;;  %v214_v47 = vsub.f32 %v111_v18, %v197_v41  ;;  %v215_v48 = vsub.f32 %v113_v21, %v197_v41  ;;  %v216_v49 = vsub.f32 %v182_v20, %v197_v41 }
 0x161   :  { %v210_v42 = vpop.xlane.xlu0 %209  ;;  %v217_v50 = vsub.f32 %v184_v28, %v197_v41 }
 0x162   :  { %v211_v44 = vmul.f32 0.0025510204, %v210_v42 }
 0x164   :  { %v213_v45 = vsub.f32 %v211_v44, %v212_v43 }
 0x166   :  { %v218_v46 = vadd.f32 1e-05, %v213_v45 }
 0x168   :  { %247 = vrsqrt.f32 %v218_v46 }
 0x175   :  { %v248_v51 = vpop.eup %247 }
 0x176   :  { %v220_v52 = vmul.f32 %v248_v51, %v214_v47  ;;  %v221_v53 = vmul.f32 %v248_v51, %v215_v48  ;;  %v222_v54 = vmul.f32 %v248_v51, %v216_v49  ;;  %v223_v55 = vmul.f32 %v248_v51, %v217_v50 }
 0x178   :  { %v228_v56 = vcombine.low %v220_v52, %v221_v53  ;;  %v229_v57 = vcombine.low %v222_v54, %v223_v55 }
 0x17a   :  { %232 = vst [vmem:[%s335_s2] sm:$0x77] %v228_v56  ;;  %235 = vst.msk [vmem:[%s335_s2 + $0x8] sm:$0x77] %vm234_vm4, %v229_v57 }

</bundles_post_ra>
